<compile_context>
chip_gen: v7x
topology: tpu7x:2x2x1
jax: 0.10.0
libtpu: 0.0.40
codegen_flags: <defaults>
</compile_context>

<pallas_src>
import functools

import jax
import jax.numpy as jnp
from jax.experimental import pallas as pl
from jax.experimental.pallas import tpu as pltpu

MARGIN = 1.0   # unused in forward (kept for parity with the PyTorch module)
WEIGHT = 1.0

_NORMALIZE_EPS = 1e-12   # torch F.normalize default
_PAIRWISE_EPS = 1e-6     # torch F.pairwise_distance default
_LANE = 128


def _contrastive_kernel(x_ref, y_ref, o_ref, acc_ref, *, d_orig):
    """Streaming per-row accumulators across D tiles.

    x_ref, y_ref : (TB, TR, 128) VMEM tiles (one D-chunk of TB rows)
    o_ref        : (TB, 1)  per-row squared pairwise distance
    acc_ref      : (5, TB, 128) scratch: lane-partial Sxx, Syy, Sxy, Sx, Sy
    """
    k = pl.program_id(1)

    @pl.when(k == 0)
    def _():
        acc_ref[...] = jnp.zeros_like(acc_ref)

    x = x_ref[...].astype(jnp.float32)
    y = y_ref[...].astype(jnp.float32)

    # Reduce only the sublane (chunk) axis per step; keep the lane axis so the
    # cross-lane (XLU) reduction happens exactly once, at finalize.
    acc_ref[0, :, :] += jnp.sum(x * x, axis=1)
    acc_ref[1, :, :] += jnp.sum(y * y, axis=1)
    acc_ref[2, :, :] += jnp.sum(x * y, axis=1)
    acc_ref[3, :, :] += jnp.sum(x, axis=1)
    acc_ref[4, :, :] += jnp.sum(y, axis=1)

    @pl.when(k == pl.num_programs(1) - 1)
    def _():
        sxx = jnp.sum(acc_ref[0, :, :], axis=1, keepdims=True)   # (TB, 1)
        syy = jnp.sum(acc_ref[1, :, :], axis=1, keepdims=True)
        sxy = jnp.sum(acc_ref[2, :, :], axis=1, keepdims=True)
        sx = jnp.sum(acc_ref[3, :, :], axis=1, keepdims=True)
        sy = jnp.sum(acc_ref[4, :, :], axis=1, keepdims=True)

        # 1 / max(||x||, 1e-12) == rsqrt(max(Sxx, 1e-24)) -> EUP, no VALU divide.
        inv_x = jax.lax.rsqrt(jnp.maximum(sxx, _NORMALIZE_EPS * _NORMALIZE_EPS))
        inv_y = jax.lax.rsqrt(jnp.maximum(syy, _NORMALIZE_EPS * _NORMALIZE_EPS))

        # ||nx - ny + eps||^2 expanded (nx = x*inv_x, ny = y*inv_y):
        #   ||nx||^2 + ||ny||^2 - 2<nx,ny> + 2*eps*(sum(nx) - sum(ny)) + D*eps^2
        sq = (sxx * (inv_x * inv_x) + syy * (inv_y * inv_y)
              - 2.0 * sxy * (inv_x * inv_y)
              + 2.0 * _PAIRWISE_EPS * (sx * inv_x - sy * inv_y)
              + d_orig * (_PAIRWISE_EPS * _PAIRWISE_EPS))
        o_ref[...] = sq


def contrastive_euclidean_loss(labeled_features, unlabeled_features,
                               margin=MARGIN, weight=WEIGHT):
    del margin  # not used in the forward pass (same as the PyTorch module)
    b = labeled_features.shape[0]
    x = labeled_features.reshape(b, -1)
    y = unlabeled_features.reshape(b, -1)
    d = x.shape[1]

    # ---- tiling ----------------------------------------------------------
    # Rows are viewed as (R, 128); the D reduction is tiled in (tr, 128) chunks
    # (<= 16K elements / row / step => <= 512 KiB f32 per input block at tb=8,
    # ~2 MiB double-buffered for both inputs — safe on every generation).
    r = pl.cdiv(d, _LANE)
    tr = min(128, ((r + 7) // 8) * 8)
    r_pad = ((r + tr - 1) // tr) * tr
    d_pad = r_pad * _LANE
    if d_pad != d:
        # Zero padding contributes nothing to the accumulators; the eps^2 term
        # in the finalize uses the original D.
        x = jnp.pad(x, ((0, 0), (0, d_pad - d)))
        y = jnp.pad(y, ((0, 0), (0, d_pad - d)))
    x = x.reshape(b, r_pad, _LANE)
    y = y.reshape(b, r_pad, _LANE)

    tb = 8 if (b % 8 == 0) else b          # batch tile ("parallel" axis)
    grid = (b // tb, r_pad // tr)          # D-chunk axis trailing ("arbitrary")

    per_row = pl.pallas_call(
        functools.partial(_contrastive_kernel, d_orig=float(d)),
        out_shape=jax.ShapeDtypeStruct((b, 1), jnp.float32),
        grid_spec=pltpu.PrefetchScalarGridSpec(
            num_scalar_prefetch=0,
            grid=grid,
            in_specs=[
                pl.BlockSpec((tb, tr, _LANE), lambda i, k: (i, k, 0)),
                pl.BlockSpec((tb, tr, _LANE), lambda i, k: (i, k, 0)),
            ],
            out_specs=pl.BlockSpec((tb, 1), lambda i, k: (i, 0)),
            scratch_shapes=[pltpu.VMEM((5, tb, _LANE), jnp.float32)],
        ),
        compiler_params=pltpu.CompilerParams(
            dimension_semantics=("parallel", "arbitrary")),
    )(x, y)

    # Tiny final reduction over B scalars + weight: let XLA fuse it.
    return jnp.mean(per_row) * weight


if __name__ == "__main__":
    key = jax.random.PRNGKey(0)
    k1, k2 = jax.random.split(key)

    # Small NCHW-like feature maps: batch=2, channels=4, spatial=16x16.
    labeled = jax.random.normal(k1, (2, 4, 16, 16), dtype=jnp.float32)
    unlabeled = jax.random.normal(k2, (2, 4, 16, 16), dtype=jnp.float32)

    loss = contrastive_euclidean_loss(labeled, unlabeled)
    jax.block_until_ready(loss)

    # Pure-JAX reference check (direct formulation, outside Pallas).
    xr = labeled.reshape(2, -1)
    yr = unlabeled.reshape(2, -1)
    xr = xr / jnp.maximum(jnp.linalg.norm(xr, axis=1, keepdims=True), 1e-12)
    yr = yr / jnp.maximum(jnp.linalg.norm(yr, axis=1, keepdims=True), 1e-12)
    ref = jnp.mean(jnp.sum((xr - yr + 1e-6) ** 2, axis=1)) * WEIGHT
    assert jnp.allclose(loss, ref, rtol=1e-4, atol=1e-5), (loss, ref)

    print("KERNEL_OK")
</pallas_src>

<mosaic_0001>
module attributes {stable_mosaic.version = 11 : i64} {
  func.func @_contrastive_kernel(%arg0: i32, %arg1: i32, %arg2: memref<2x8x128xf32, #tpu.memory_space<vmem>>, %arg3: memref<2x8x128xf32, #tpu.memory_space<vmem>>, %arg4: memref<2x1xf32, #tpu.memory_space<vmem>>, %arg5: memref<5x2x128xf32, #tpu.memory_space<vmem>>) attributes {dimension_semantics = [#tpu.dimension_semantics<parallel>, #tpu.dimension_semantics<arbitrary>], iteration_bounds = array<i64: 1, 1>, scalar_prefetch = 0 : i64, scratch_operands = 1 : i64, tpu.core_type = #tpu.core_type<tc>, window_params = [{transform_indices = @transform_0, window_bounds = array<i64: 2, 8, 128>}, {transform_indices = @transform_1, window_bounds = array<i64: 2, 8, 128>}, {transform_indices = @transform_2, window_bounds = array<i64: 2, 1>}]} {
    %c0_i32 = arith.constant 0 : i32
    %0 = arith.cmpi eq, %arg1, %c0_i32 : i32
    %1 = arith.extui %0 : i1 to i32
    %c0_i32_0 = arith.constant 0 : i32
    %2 = arith.cmpi ne, %1, %c0_i32_0 : i32
    scf.if %2 {
      %cst_38 = arith.constant 0.000000e+00 : f32
      %46 = vector.broadcast %cst_38 : f32 to vector<5x2x128xf32>
      %c0_39 = arith.constant 0 : index
      %c0_40 = arith.constant 0 : index
      %c0_41 = arith.constant 0 : index
      %47 = vector.load %arg5[%c0_39, %c0_40, %c0_41] : memref<5x2x128xf32, #tpu.memory_space<vmem>>, vector<5x2x128xf32>
      tpu.vector_store %arg5[%c0_39, %c0_40, %c0_41], %46 {strides = array<i32>} : memref<5x2x128xf32, #tpu.memory_space<vmem>>, vector<5x2x128xf32>,
    } else {
    }
    %c0 = arith.constant 0 : index
    %c0_1 = arith.constant 0 : index
    %c0_2 = arith.constant 0 : index
    %3 = vector.load %arg2[%c0, %c0_1, %c0_2] : memref<2x8x128xf32, #tpu.memory_space<vmem>>, vector<2x8x128xf32>
    %c0_3 = arith.constant 0 : index
    %c0_4 = arith.constant 0 : index
    %c0_5 = arith.constant 0 : index
    %4 = vector.load %arg3[%c0_3, %c0_4, %c0_5] : memref<2x8x128xf32, #tpu.memory_space<vmem>>, vector<2x8x128xf32>
    %c0_6 = arith.constant 0 : index
    %c0_7 = arith.constant 0 : index
    %c0_8 = arith.constant 0 : index
    %5 = vector.load %arg5[%c0_6, %c0_7, %c0_8] : memref<5x2x128xf32, #tpu.memory_space<vmem>>, vector<1x2x128xf32>
    %6 = vector.shape_cast %5 : vector<1x2x128xf32> to vector<2x128xf32>
    %7 = arith.mulf %3, %3 : vector<2x8x128xf32>
    %cst = arith.constant dense<0.000000e+00> : vector<2x128xf32>
    %8 = vector.multi_reduction <add>, %7, %cst [1] : vector<2x8x128xf32> to vector<2x128xf32>
    %9 = arith.addf %6, %8 : vector<2x128xf32>
    %c0_9 = arith.constant 0 : index
    %c0_10 = arith.constant 0 : index
    %c0_11 = arith.constant 0 : index
    %10 = vector.load %arg5[%c0_9, %c0_10, %c0_11] : memref<5x2x128xf32, #tpu.memory_space<vmem>>, vector<1x2x128xf32>
    %11 = vector.shape_cast %10 : vector<1x2x128xf32> to vector<2x128xf32>
    %12 = vector.shape_cast %9 : vector<2x128xf32> to vector<1x2x128xf32>
    tpu.vector_store %arg5[%c0_9, %c0_10, %c0_11], %12 {strides = array<i32>} : memref<5x2x128xf32, #tpu.memory_space<vmem>>, vector<1x2x128xf32>,
    %c1 = arith.constant 1 : index
    %c0_12 = arith.constant 0 : index
    %c0_13 = arith.constant 0 : index
    %13 = vector.load %arg5[%c1, %c0_12, %c0_13] : memref<5x2x128xf32, #tpu.memory_space<vmem>>, vector<1x2x128xf32>
    %14 = vector.shape_cast %13 : vector<1x2x128xf32> to vector<2x128xf32>
    %15 = arith.mulf %4, %4 : vector<2x8x128xf32>
    %cst_14 = arith.constant dense<0.000000e+00> : vector<2x128xf32>
    %16 = vector.multi_reduction <add>, %15, %cst_14 [1] : vector<2x8x128xf32> to vector<2x128xf32>
    %17 = arith.addf %14, %16 : vector<2x128xf32>
    %c1_15 = arith.constant 1 : index
    %c0_16 = arith.constant 0 : index
    %c0_17 = arith.constant 0 : index
    %18 = vector.load %arg5[%c1_15, %c0_16, %c0_17] : memref<5x2x128xf32, #tpu.memory_space<vmem>>, vector<1x2x128xf32>
    %19 = vector.shape_cast %18 : vector<1x2x128xf32> to vector<2x128xf32>
    %20 = vector.shape_cast %17 : vector<2x128xf32> to vector<1x2x128xf32>
    tpu.vector_store %arg5[%c1_15, %c0_16, %c0_17], %20 {strides = array<i32>} : memref<5x2x128xf32, #tpu.memory_space<vmem>>, vector<1x2x128xf32>,
    %c2 = arith.constant 2 : index
    %c0_18 = arith.constant 0 : index
    %c0_19 = arith.constant 0 : index
    %21 = vector.load %arg5[%c2, %c0_18, %c0_19] : memref<5x2x128xf32, #tpu.memory_space<vmem>>, vector<1x2x128xf32>
    %22 = vector.shape_cast %21 : vector<1x2x128xf32> to vector<2x128xf32>
    %23 = arith.mulf %3, %4 : vector<2x8x128xf32>
    %cst_20 = arith.constant dense<0.000000e+00> : vector<2x128xf32>
    %24 = vector.multi_reduction <add>, %23, %cst_20 [1] : vector<2x8x128xf32> to vector<2x128xf32>
    %25 = arith.addf %22, %24 : vector<2x128xf32>
    %c2_21 = arith.constant 2 : index
    %c0_22 = arith.constant 0 : index
    %c0_23 = arith.constant 0 : index
    %26 = vector.load %arg5[%c2_21, %c0_22, %c0_23] : memref<5x2x128xf32, #tpu.memory_space<vmem>>, vector<1x2x128xf32>
    %27 = vector.shape_cast %26 : vector<1x2x128xf32> to vector<2x128xf32>
    %28 = vector.shape_cast %25 : vector<2x128xf32> to vector<1x2x128xf32>
    tpu.vector_store %arg5[%c2_21, %c0_22, %c0_23], %28 {strides = array<i32>} : memref<5x2x128xf32, #tpu.memory_space<vmem>>, vector<1x2x128xf32>,
    %c3 = arith.constant 3 : index
    %c0_24 = arith.constant 0 : index
    %c0_25 = arith.constant 0 : index
    %29 = vector.load %arg5[%c3, %c0_24, %c0_25] : memref<5x2x128xf32, #tpu.memory_space<vmem>>, vector<1x2x128xf32>
    %30 = vector.shape_cast %29 : vector<1x2x128xf32> to vector<2x128xf32>
    %cst_26 = arith.constant dense<0.000000e+00> : vector<2x128xf32>
    %31 = vector.multi_reduction <add>, %3, %cst_26 [1] : vector<2x8x128xf32> to vector<2x128xf32>
    %32 = arith.addf %30, %31 : vector<2x128xf32>
    %c3_27 = arith.constant 3 : index
    %c0_28 = arith.constant 0 : index
    %c0_29 = arith.constant 0 : index
    %33 = vector.load %arg5[%c3_27, %c0_28, %c0_29] : memref<5x2x128xf32, #tpu.memory_space<vmem>>, vector<1x2x128xf32>
    %34 = vector.shape_cast %33 : vector<1x2x128xf32> to vector<2x128xf32>
    %35 = vector.shape_cast %32 : vector<2x128xf32> to vector<1x2x128xf32>
    tpu.vector_store %arg5[%c3_27, %c0_28, %c0_29], %35 {strides = array<i32>} : memref<5x2x128xf32, #tpu.memory_space<vmem>>, vector<1x2x128xf32>,
    %c4 = arith.constant 4 : index
    %c0_30 = arith.constant 0 : index
    %c0_31 = arith.constant 0 : index
    %36 = vector.load %arg5[%c4, %c0_30, %c0_31] : memref<5x2x128xf32, #tpu.memory_space<vmem>>, vector<1x2x128xf32>
    %37 = vector.shape_cast %36 : vector<1x2x128xf32> to vector<2x128xf32>
    %cst_32 = arith.constant dense<0.000000e+00> : vector<2x128xf32>
    %38 = vector.multi_reduction <add>, %4, %cst_32 [1] : vector<2x8x128xf32> to vector<2x128xf32>
    %39 = arith.addf %37, %38 : vector<2x128xf32>
    %c4_33 = arith.constant 4 : index
    %c0_34 = arith.constant 0 : index
    %c0_35 = arith.constant 0 : index
    %40 = vector.load %arg5[%c4_33, %c0_34, %c0_35] : memref<5x2x128xf32, #tpu.memory_space<vmem>>, vector<1x2x128xf32>
    %41 = vector.shape_cast %40 : vector<1x2x128xf32> to vector<2x128xf32>
    %42 = vector.shape_cast %39 : vector<2x128xf32> to vector<1x2x128xf32>
    tpu.vector_store %arg5[%c4_33, %c0_34, %c0_35], %42 {strides = array<i32>} : memref<5x2x128xf32, #tpu.memory_space<vmem>>, vector<1x2x128xf32>,
    %c0_i32_36 = arith.constant 0 : i32
    %43 = arith.cmpi eq, %arg1, %c0_i32_36 : i32
    %44 = arith.extui %43 : i1 to i32
    %c0_i32_37 = arith.constant 0 : i32
    %45 = arith.cmpi ne, %44, %c0_i32_37 : i32
    scf.if %45 {
      %c0_38 = arith.constant 0 : index
      %c0_39 = arith.constant 0 : index
      %c0_40 = arith.constant 0 : index
      %46 = vector.load %arg5[%c0_38, %c0_39, %c0_40] : memref<5x2x128xf32, #tpu.memory_space<vmem>>, vector<1x2x128xf32>
      %47 = vector.shape_cast %46 : vector<1x2x128xf32> to vector<2x128xf32>
      %cst_41 = arith.constant dense<0.000000e+00> : vector<2xf32>
      %48 = vector.multi_reduction <add>, %47, %cst_41 [1] : vector<2x128xf32> to vector<2xf32>
      %49 = vector.shape_cast %48 : vector<2xf32> to vector<2x1xf32>
      %c1_42 = arith.constant 1 : index
      %c0_43 = arith.constant 0 : index
      %c0_44 = arith.constant 0 : index
      %50 = vector.load %arg5[%c1_42, %c0_43, %c0_44] : memref<5x2x128xf32, #tpu.memory_space<vmem>>, vector<1x2x128xf32>
      %51 = vector.shape_cast %50 : vector<1x2x128xf32> to vector<2x128xf32>
      %cst_45 = arith.constant dense<0.000000e+00> : vector<2xf32>
      %52 = vector.multi_reduction <add>, %51, %cst_45 [1] : vector<2x128xf32> to vector<2xf32>
      %53 = vector.shape_cast %52 : vector<2xf32> to vector<2x1xf32>
      %c2_46 = arith.constant 2 : index
      %c0_47 = arith.constant 0 : index
      %c0_48 = arith.constant 0 : index
      %54 = vector.load %arg5[%c2_46, %c0_47, %c0_48] : memref<5x2x128xf32, #tpu.memory_space<vmem>>, vector<1x2x128xf32>
      %55 = vector.shape_cast %54 : vector<1x2x128xf32> to vector<2x128xf32>
      %cst_49 = arith.constant dense<0.000000e+00> : vector<2xf32>
      %56 = vector.multi_reduction <add>, %55, %cst_49 [1] : vector<2x128xf32> to vector<2xf32>
      %57 = vector.shape_cast %56 : vector<2xf32> to vector<2x1xf32>
      %c3_50 = arith.constant 3 : index
      %c0_51 = arith.constant 0 : index
      %c0_52 = arith.constant 0 : index
      %58 = vector.load %arg5[%c3_50, %c0_51, %c0_52] : memref<5x2x128xf32, #tpu.memory_space<vmem>>, vector<1x2x128xf32>
      %59 = vector.shape_cast %58 : vector<1x2x128xf32> to vector<2x128xf32>
      %cst_53 = arith.constant dense<0.000000e+00> : vector<2xf32>
      %60 = vector.multi_reduction <add>, %59, %cst_53 [1] : vector<2x128xf32> to vector<2xf32>
      %61 = vector.shape_cast %60 : vector<2xf32> to vector<2x1xf32>
      %c4_54 = arith.constant 4 : index
      %c0_55 = arith.constant 0 : index
      %c0_56 = arith.constant 0 : index
      %62 = vector.load %arg5[%c4_54, %c0_55, %c0_56] : memref<5x2x128xf32, #tpu.memory_space<vmem>>, vector<1x2x128xf32>
      %63 = vector.shape_cast %62 : vector<1x2x128xf32> to vector<2x128xf32>
      %cst_57 = arith.constant dense<0.000000e+00> : vector<2xf32>
      %64 = vector.multi_reduction <add>, %63, %cst_57 [1] : vector<2x128xf32> to vector<2xf32>
      %65 = vector.shape_cast %64 : vector<2xf32> to vector<2x1xf32>
      %cst_58 = arith.constant 1.000000e-24 : f32
      %66 = vector.broadcast %cst_58 : f32 to vector<2x1xf32>
      %67 = arith.maximumf %49, %66 : vector<2x1xf32>
      %68 = math.rsqrt %67 : vector<2x1xf32>
      %cst_59 = arith.constant 1.000000e-24 : f32
      %69 = vector.broadcast %cst_59 : f32 to vector<2x1xf32>
      %70 = arith.maximumf %53, %69 : vector<2x1xf32>
      %71 = math.rsqrt %70 : vector<2x1xf32>
      %72 = arith.mulf %68, %68 : vector<2x1xf32>
      %73 = arith.mulf %49, %72 : vector<2x1xf32>
      %74 = arith.mulf %71, %71 : vector<2x1xf32>
      %75 = arith.mulf %53, %74 : vector<2x1xf32>
      %76 = arith.addf %73, %75 : vector<2x1xf32>
      %cst_60 = arith.constant 2.000000e+00 : f32
      %77 = vector.broadcast %cst_60 : f32 to vector<2x1xf32>
      %78 = arith.mulf %77, %57 : vector<2x1xf32>
      %79 = arith.mulf %68, %71 : vector<2x1xf32>
      %80 = arith.mulf %78, %79 : vector<2x1xf32>
      %81 = arith.subf %76, %80 : vector<2x1xf32>
      %82 = arith.mulf %61, %68 : vector<2x1xf32>
      %83 = arith.mulf %65, %71 : vector<2x1xf32>
      %84 = arith.subf %82, %83 : vector<2x1xf32>
      %cst_61 = arith.constant 2.000000e-06 : f32
      %85 = vector.broadcast %cst_61 : f32 to vector<2x1xf32>
      %86 = arith.mulf %85, %84 : vector<2x1xf32>
      %87 = arith.addf %81, %86 : vector<2x1xf32>
      %cst_62 = arith.constant 1.024000e-09 : f32
      %88 = vector.broadcast %cst_62 : f32 to vector<2x1xf32>
      %89 = arith.addf %87, %88 : vector<2x1xf32>
      %c0_63 = arith.constant 0 : index
      %c0_64 = arith.constant 0 : index
      %90 = vector.load %arg4[%c0_63, %c0_64] : memref<2x1xf32, #tpu.memory_space<vmem>>, vector<2x1xf32>
      tpu.vector_store %arg4[%c0_63, %c0_64], %89 {strides = array<i32>} : memref<2x1xf32, #tpu.memory_space<vmem>>, vector<2x1xf32>,
    } else {
    }
    return
  }
  func.func @transform_0(%arg0: i32, %arg1: i32) -> (i32, i32, i32) {
    %c0_i32 = arith.constant 0 : i32
    %c0_i32_0 = arith.constant 0 : i32
    return %arg0, %arg1, %c0_i32 : i32, i32, i32
  }
  func.func @transform_1(%arg0: i32, %arg1: i32) -> (i32, i32, i32) {
    %c0_i32 = arith.constant 0 : i32
    %c0_i32_0 = arith.constant 0 : i32
    return %arg0, %arg1, %c0_i32 : i32, i32, i32
  }
  func.func @transform_2(%arg0: i32, %arg1: i32) -> (i32, i32) {
    %c0_i32 = arith.constant 0 : i32
    %c0_i32_0 = arith.constant 0 : i32
    return %arg0, %c0_i32 : i32, i32
  }
}

</mosaic_0001>

<bundles_post_ra>
// kernel: tpu_custom_call.1
= control target key start
LH: loop header
LB: loop body
LE: loop exit
PB: predicated region body
PF: predicated region fallthrough
CT: control target
= control target key end

     0   :  { %7 = vsyncpa [#allocation4], 0  ;;  %s337_s0 = inlined_call_operand.hbm [shape: f32[2,8,128], index: 0, kind: input, shape index: {}]   ;;  %s338_s1 = inlined_call_operand.hbm [shape: f32[2,8,128], index: 1, kind: input, shape index: {}]   ;;  %s339_s2 = inlined_call_operand.vmem [shape: f32[2,1], index: 2, kind: output, shape index: {}]  }
   0x1   :  { %8 = vsyncpa [#allocation6], 0  ;;  %s266_s9 = smov [#allocation3]   ;;  %s218_s13 = scalar_lea.hbm %s337_s0, 256 }
   0x2   :  { %s14_s10 = sshll.u32 %s266_s9, 4  ;;  %p219_p0 = scmp.ne.s32.totalorder %s337_s0, %s218_s13  ;;  %s15_s10 = int_to_ptr.vmem [resolvable:$true] %s14_s10 }
   0x3   :  { %p222_p1 = scmp.lt.u32.totalorder %s218_s13, %s337_s0 }
   0x5   :  { %p224_p2 = pnand %p222_p1, %p219_p0 }
   0x7   :  { %227 = shalt.err (!%p224_p2)
}
   0x8   :  { %s228_s18 = scalar_lea.vmem %s15_s10, 256  ;;  %p233_p4 = scmp.lt.s32.totalorder %s15_s10, %s15_s10 }
   0x9   :  { %p229_p3 = scmp.ne.s32.totalorder %s15_s10, %s228_s18  ;;  %p234_p5 = scmp.lt.s32.totalorder %s228_s18, %s228_s18 }
   0xb   :  { %p235_p6 = por %p234_p5, %p233_p4 }
   0xd   :  { %p236_p7 = pnand %p235_p6, %p229_p3 }
   0xf   :  { %239 = shalt.err (!%p236_p7)
}
  0x10   :  { %s267_s19 = smov 128   ;;  %s268_s20 = smov 8  }
  0x11   :  { %20 = dma.hbm_to_vmem [thread:$0]  %s337_s0, 256, %s15_s10, [#allocation4], %s267_s19, %s267_s19, %s268_s20  }
  0x12   :  { %s269_s23 = smov [#allocation5]   ;;  %s240_s27 = scalar_lea.hbm %s338_s1, 256 }
  0x13   :  { %s26_s24 = sshll.u32 %s269_s23, 4  ;;  %p241_p8 = scmp.ne.s32.totalorder %s338_s1, %s240_s27  ;;  %s27_s24 = int_to_ptr.vmem [resolvable:$true] %s26_s24 }
  0x14   :  { %p244_p9 = scmp.lt.u32.totalorder %s240_s27, %s338_s1 }
  0x16   :  { %p246_p10 = pnand %p244_p9, %p241_p8 }
  0x18   :  { %249 = shalt.err (!%p246_p10)
}
  0x19   :  { %s250_s4 = scalar_lea.vmem %s27_s24, 256  ;;  %p255_p12 = scmp.lt.s32.totalorder %s27_s24, %s27_s24 }
  0x1a   :  { %p251_p11 = scmp.ne.s32.totalorder %s27_s24, %s250_s4  ;;  %p256_p13 = scmp.lt.s32.totalorder %s250_s4, %s250_s4 }
  0x1c   :  { %p257_p0 = por %p256_p13, %p255_p12 }
  0x1e   :  { %p258_p1 = pnand %p257_p0, %p251_p11 }
  0x20   :  { %261 = shalt.err (!%p258_p1)
}
  0x21   :  { %32 = dma.hbm_to_vmem [thread:$0]  %s338_s1, 256, %s27_s24, [#allocation6], %s267_s19, %s267_s19, %s268_s20  }
  0x22   :  { %262 = dma.done.wait [#allocation4], 256  }
  0x23   :  { %263 = vsyncadd [#allocation4], 4294967040 }
  0x24   :  { %264 = dma.done.wait [#allocation6], 256  }
  0x25   :  { %265 = vsyncadd [#allocation6], 4294967040  ;;  %v270_v0 = vmov 0.0   ;;  %v48_v1 = vld [vmem:[#allocation3] sm:$0xff]  ;;  %v49_v2 = vld [vmem:[#allocation3 + $0x8] sm:$0xff]  ;;  %vm69_vm0 = vcmask 1041409  }
  0x26   :  { %43 = vst [vmem:[#allocation2] sm:$0x3] %v270_v0  ;;  %44 = vst [vmem:[#allocation2 + $0x2] sm:$0x3] %v270_v0  ;;  %v310_v3 = vld [vmem:[#allocation5] sm:$0xff]  ;;  %v53_v4 = vmul.f32 %v48_v1, %v48_v1  ;;  %v54_v5 = vmul.f32 %v49_v2, %v49_v2  ;;  %v312_v6 = vld [vmem:[#allocation5 + $0x8] sm:$0xff] }
  0x27   :  { %45 = vst [vmem:[#allocation2 + $0x4] sm:$0x3] %v270_v0  ;;  %46 = vst [vmem:[#allocation2 + $0x6] sm:$0x3] %v270_v0  ;;  %v76_v7 = vmul.f32 %v310_v3, %v310_v3  ;;  %v98_v8 = vmul.f32 %v310_v3, %v48_v1  ;;  %v77_v9 = vmul.f32 %v312_v6, %v312_v6  ;;  %v120_v11 = vrot.slane %v48_v1, 4 }
  0x28   :  { %47 = vst [vmem:[#allocation2 + $0x8] sm:$0x3] %v270_v0  ;;  %v99_v10 = vmul.f32 %v312_v6, %v49_v2  ;;  %v126_v12 = vrot.slane %v49_v2, 4  ;;  %v55_v13 = vrot.slane %v53_v4, 4  ;;  %v61_v14 = vrot.slane %v54_v5, 4 }
  0x29   :  { %v78_v15 = vrot.slane %v76_v7, 4  ;;  %v100_v16 = vrot.slane %v98_v8, 4  ;;  %v84_v17 = vrot.slane %v77_v9, 4  ;;  %v121_v19 = vadd.f32 %v120_v11, %v48_v1 }
  0x2a   :  { %v106_v18 = vrot.slane %v99_v10, 4  ;;  %v127_v20 = vadd.f32 %v126_v12, %v49_v2  ;;  %v56_v21 = vadd.f32 %v55_v13, %v53_v4  ;;  %v62_v22 = vadd.f32 %v61_v14, %v54_v5 }
  0x2b   :  { %v79_v23 = vadd.f32 %v78_v15, %v76_v7  ;;  %v101_v24 = vadd.f32 %v100_v16, %v98_v8  ;;  %v85_v25 = vadd.f32 %v84_v17, %v77_v9  ;;  %v122_v27 = vrot.slane %v121_v19, 2 }
  0x2c   :  { %v107_v26 = vadd.f32 %v106_v18, %v99_v10  ;;  %v128_v28 = vrot.slane %v127_v20, 2  ;;  %v57_v29 = vrot.slane %v56_v21, 2  ;;  %v63_v30 = vrot.slane %v62_v22, 2 }
  0x2d   :  { %v80_v31 = vrot.slane %v79_v23, 2  ;;  %v102_v32 = vrot.slane %v101_v24, 2  ;;  %v86_v33 = vrot.slane %v85_v25, 2  ;;  %v123_v35 = vadd.f32 %v122_v27, %v121_v19  ;;  %v52_v54 = vld [vmem:[#allocation2] sm:$0x3] }
  0x2e   :  { %v108_v34 = vrot.slane %v107_v26, 2  ;;  %v129_v36 = vadd.f32 %v128_v28, %v127_v20  ;;  %v58_v37 = vadd.f32 %v57_v29, %v56_v21  ;;  %v64_v38 = vadd.f32 %v63_v30, %v62_v22  ;;  %v119_v51 = vld [vmem:[#allocation2 + $0x6] sm:$0x3]  ;;  %v75_v59 = vld [vmem:[#allocation2 + $0x2] sm:$0x3] }
  0x2f   :  { %v81_v39 = vadd.f32 %v80_v31, %v79_v23  ;;  %v103_v40 = vadd.f32 %v102_v32, %v101_v24  ;;  %v87_v41 = vadd.f32 %v86_v33, %v85_v25  ;;  %v124_v43 = vrot.slane %v123_v35, 1  ;;  %v97_v61 = vld [vmem:[#allocation2 + $0x4] sm:$0x3]  ;;  %v139_v22 = vld [vmem:[#allocation2 + $0x8] sm:$0x3] }
  0x30   :  { %v109_v42 = vadd.f32 %v108_v34, %v107_v26  ;;  %v130_v44 = vrot.slane %v129_v36, 1  ;;  %v59_v45 = vrot.slane %v58_v37, 1  ;;  %v65_v46 = vrot.slane %v64_v38, 1 }
  0x31   :  { %v82_v47 = vrot.slane %v81_v39, 1  ;;  %v104_v48 = vrot.slane %v103_v40, 1  ;;  %v88_v49 = vrot.slane %v87_v41, 1  ;;  %v125_v52 = vadd.f32 %v124_v43, %v123_v35 }
  0x32   :  { %v110_v50 = vrot.slane %v109_v42, 1  ;;  %v131_v53 = vadd.f32 %v130_v44, %v129_v36  ;;  %v60_v55 = vadd.f32 %v59_v45, %v58_v37  ;;  %v66_v56 = vadd.f32 %v65_v46, %v64_v38 }
  0x33   :  { %v83_v57 = vadd.f32 %v82_v47, %v81_v39  ;;  %v105_v58 = vadd.f32 %v104_v48, %v103_v40  ;;  %v89_v60 = vadd.f32 %v88_v49, %v87_v41  ;;  %v140_v0 = vrot.slane %v310_v3, 4 }
  0x34   :  { %v111_v62 = vadd.f32 %v110_v50, %v109_v42  ;;  %v134_v63 = vsel %vm69_vm0, %v131_v53, %v125_v52  ;;  %v70_v1 = vsel %vm69_vm0, %v66_v56, %v60_v55  ;;  %v146_v4 = vrot.slane %v312_v6, 4 }
  0x35   :  { %v136_v2 = vadd.f32 %v134_v63, %v119_v51  ;;  %v72_v5 = vadd.f32 %v70_v1, %v52_v54  ;;  %v92_v7 = vsel %vm69_vm0, %v89_v60, %v83_v57  ;;  %v141_v9 = vadd.f32 %v140_v0, %v310_v3 }
  0x36   :  { %v114_v8 = vsel %vm69_vm0, %v111_v62, %v105_v58  ;;  %v94_v10 = vadd.f32 %v92_v7, %v75_v59  ;;  %v147_v12 = vadd.f32 %v146_v4, %v312_v6  ;;  %vm162_vm1 = vcmask 1041408  }
  0x37   :  { %v116_v11 = vadd.f32 %v114_v8, %v97_v61  ;;  %137 = vst [vmem:[#allocation2 + $0x6] sm:$0x3] %v136_v2  ;;  %73 = vst [vmem:[#allocation2] sm:$0x3] %v72_v5  ;;  %v142_v13 = vrot.slane %v141_v9, 2  ;;  %vm201_vm2 = vcmask 1024  }
  0x38   :  { %95 = vst [vmem:[#allocation2 + $0x2] sm:$0x3] %v94_v10  ;;  %v148_v14 = vrot.slane %v147_v12, 2 }
  0x39   :  { %117 = vst [vmem:[#allocation2 + $0x4] sm:$0x3] %v116_v11  ;;  %v143_v15 = vadd.f32 %v142_v13, %v141_v9 }
  0x3a   :  { %v149_v16 = vadd.f32 %v148_v14, %v147_v12 }
  0x3b   :  { %v144_v17 = vrot.slane %v143_v15, 1 }
  0x3c   :  { %v150_v18 = vrot.slane %v149_v16, 1 }
  0x3d   :  { %v145_v19 = vadd.f32 %v144_v17, %v143_v15 }
  0x3e   :  { %v161_v20 = vld [vmem:[#allocation2] sm:$0x3]  ;;  %v174_v21 = vld [vmem:[#allocation2 + $0x6] sm:$0x3]  ;;  %v151_v3 = vadd.f32 %v150_v18, %v149_v16 }
  0x3f   :  { %v163_v23 = vsel %vm162_vm1, %v161_v20, 0.0  ;;  %v166_v24 = vld [vmem:[#allocation2 + $0x2] sm:$0x3]  ;;  %v175_v29 = vsel %vm162_vm1, %v174_v21, 0.0 }
  0x40   :  { %v170_v25 = vld [vmem:[#allocation2 + $0x4] sm:$0x3]  ;;  %164 = vadd.xlane.f32.xlu0 %v163_v23  ;;  %v154_v26 = vsel %vm69_vm0, %v151_v3, %v145_v19  ;;  %v167_v27 = vsel %vm162_vm1, %v166_v24, 0.0 }
  0x41   :  { %v171_v6 = vsel %vm162_vm1, %v170_v25, 0.0  ;;  %v156_v28 = vadd.f32 %v154_v26, %v139_v22 }
  0x42   :  { %172 = vadd.xlane.f32.xlu1 %v171_v6 }
  0x43   :  { %157 = vst [vmem:[#allocation2 + $0x8] sm:$0x3] %v156_v28 }
  0x44   :  { %168 = vadd.xlane.f32.xlu0 %v167_v27 }
  0x46   :  { %176 = vadd.xlane.f32.xlu1 %v175_v29 }
  0x4a   :  { %v178_v30 = vld [vmem:[#allocation2 + $0x8] sm:$0x3] }
  0x4b   :  { %v179_v31 = vsel %vm162_vm1, %v178_v30, 0.0 }
  0x4c   :  { %180 = vadd.xlane.f32.xlu0 %v179_v31 }
  0xcd   :  { %v165_v32 = vpop.xlane.xlu0 %164 }
  0xce   :  { %v182_v33 = vmax.f32 %v165_v32, 1e-24 }
  0xcf   :  { %v173_v36 = vpop.xlane.xlu1 %172 }
  0xd0   :  { %214 = vrsqrt.f32 %v182_v33  ;;  %v191_v48 = vmul.f32 2.0, %v173_v36 }
  0xd1   :  { %v169_v34 = vpop.xlane.xlu0 %168 }
  0xd2   :  { %v184_v35 = vmax.f32 %v169_v34, 1e-24 }
  0xd3   :  { %v177_v38 = vpop.xlane.xlu1 %176 }
  0xd4   :  { %216 = vrsqrt.f32 %v184_v35 }
  0xd9   :  { %v181_v39 = vpop.xlane.xlu0 %180 }
  0xda   :  { %v215_v37 = vpop.eup %214 }
  0xdb   :  { %v186_v40 = vmul.f32 %v215_v37, %v215_v37  ;;  %v195_v44 = vmul.f32 %v215_v37, %v177_v38 }
  0xdd   :  { %v187_v46 = vmul.f32 %v186_v40, %v165_v32 }
  0xde   :  { %v217_v41 = vpop.eup %216 }
  0xdf   :  { %v188_v42 = vmul.f32 %v217_v41, %v217_v41  ;;  %v192_v43 = vmul.f32 %v217_v41, %v215_v37  ;;  %v196_v45 = vmul.f32 %v217_v41, %v181_v39 }
  0xe1   :  { %v189_v47 = vmul.f32 %v188_v42, %v169_v34  ;;  %v197_v49 = vsub.f32 %v195_v44, %v196_v45  ;;  %v193_v51 = vmul.f32 %v192_v43, %v191_v48 }
  0xe3   :  { %v190_v50 = vadd.f32 %v189_v47, %v187_v46  ;;  %v198_v53 = vmul.f32 2e-06, %v197_v49 }
  0xe5   :  { %v194_v52 = vsub.f32 %v190_v50, %v193_v51 }
  0xe7   :  { %v199_v54 = vadd.f32 %v198_v53, %v194_v52 }
  0xe9   :  { %v200_v55 = vadd.f32 1.024e-09, %v199_v54 }
  0xeb   :  { %202 = vst.msk [vmem:[%s339_s2] sm:$0x3] %vm201_vm2, %v200_v55 }
  0xec   :  { %207 = vsyncpa [#allocation4], 1 }
  0xed   :  { %208 = vsyncpa [#allocation6], 1 }

</bundles_post_ra>
